<compile_context>
chip_gen: v5e
topology: v5e:2x2
jax: 0.10.0
libtpu: 0.0.40
codegen_flags: <defaults>
</compile_context>

<pallas_src>
import math
from functools import partial

import jax
import jax.numpy as jnp
from jax import lax
from jax.experimental import pallas as pl
from jax.experimental.pallas import tpu as pltpu

BN_EPS = 1e-5


def _round_up(x, m):
    return (x + m - 1) // m * m


# --------------------------------------------------------------------------
# Pallas kernel: K-tiled bf16 matmul + folded-BN bias + SiLU
# --------------------------------------------------------------------------
def _conv_bn_silu_kernel(x_ref, w_ref, b_ref, o_ref, acc_ref):
    """One (tile_m x Cout_p) output block, accumulated over the K grid axis."""
    @pl.when(pl.program_id(1) == 0)
    def _init():
        acc_ref[...] = jnp.zeros_like(acc_ref)

    acc_ref[...] += jnp.dot(x_ref[...], w_ref[...],
                            preferred_element_type=jnp.float32)

    @pl.when(pl.program_id(1) == pl.num_programs(1) - 1)
    def _finalize():
        y = acc_ref[...] + b_ref[...]                       # folded BN bias
        sig = pl.reciprocal(1.0 + jnp.exp(-y), approx=True)  # EUP sigmoid
        o_ref[...] = (y * sig).astype(o_ref.dtype)           # SiLU


def matmul_bias_silu(x_cols, w_mat, bias, *, tile_m=512, tile_k=512,
                     out_dtype=jnp.float32):
    """(M,K) @ (K,Cout) in bf16 on the MXU, f32 accumulate, + bias, SiLU."""
    M, K = x_cols.shape
    _, Cout = w_mat.shape

    Cp = _round_up(Cout, 128)              # lane-dense output columns
    Kp = _round_up(K, 128)
    tk = min(tile_k, Kp)
    Kp = _round_up(Kp, tk)
    Mp = _round_up(M, 8)                   # only sublane granularity when small
    tm = Mp if Mp <= tile_m else tile_m
    Mp = _round_up(Mp, tm)

    x_p = jnp.pad(x_cols.astype(jnp.bfloat16), ((0, Mp - M), (0, Kp - K)))
    w_p = jnp.pad(w_mat.astype(jnp.bfloat16), ((0, Kp - K), (0, Cp - Cout)))
    b_p = jnp.pad(bias.astype(jnp.float32).reshape(1, Cout),
                  ((0, 0), (0, Cp - Cout)))

    out_isz = jnp.dtype(out_dtype).itemsize
    vmem_bytes = (2 * tm * tk * 2          # x blocks  (double-buffered, bf16)
                  + 2 * tk * Cp * 2        # w blocks  (double-buffered, bf16)
                  + 2 * Cp * 4             # bias block
                  + 2 * tm * Cp * out_isz  # output blocks
                  + tm * Cp * 4)           # f32 accumulator scratch
    vmem_limit = int(min(max(2 * vmem_bytes, 16 * 1024 * 1024),
                         64 * 1024 * 1024))

    out = pl.pallas_call(
        _conv_bn_silu_kernel,
        out_shape=jax.ShapeDtypeStruct((Mp, Cp), out_dtype),
        grid_spec=pltpu.PrefetchScalarGridSpec(
            num_scalar_prefetch=0,
            grid=(Mp // tm, Kp // tk),     # M parallel, K reduction (last)
            in_specs=[
                pl.BlockSpec((tm, tk), lambda i, k: (i, k)),
                pl.BlockSpec((tk, Cp), lambda i, k: (k, 0)),
                pl.BlockSpec((1, Cp), lambda i, k: (0, 0)),
            ],
            out_specs=pl.BlockSpec((tm, Cp), lambda i, k: (i, 0)),
            scratch_shapes=[pltpu.VMEM((tm, Cp), jnp.float32)],
        ),
        compiler_params=pltpu.CompilerParams(
            dimension_semantics=("parallel", "arbitrary"),
            vmem_limit_bytes=vmem_limit,
        ),
    )(x_p, w_p, b_p)
    return out[:M, :Cout]


# --------------------------------------------------------------------------
# Glue: im2col and the BaseConv wrapper (NCHW in/out, like the PyTorch module)
# --------------------------------------------------------------------------
def im2col(x, k, stride, pad):
    """x: (N,H,W,C) -> (N*Ho*Wo, k*k*C) with (kh, kw, C) feature ordering."""
    N, H, W, C = x.shape
    xp = jnp.pad(x, ((0, 0), (pad, pad), (pad, pad), (0, 0)))
    Ho = (H + 2 * pad - k) // stride + 1
    Wo = (W + 2 * pad - k) // stride + 1
    cols = []
    for di in range(k):
        for dj in range(k):
            cols.append(xp[:, di:di + stride * Ho:stride,
                           dj:dj + stride * Wo:stride, :])
    patches = jnp.concatenate(cols, axis=-1)
    return patches.reshape(N * Ho * Wo, k * k * C), (N, Ho, Wo)


def base_conv(x_nchw, weight, gamma, beta, mean, var, *, stride,
              tile_m=512, tile_k=512):
    """BaseConv forward: Conv2d(bias=False) -> BatchNorm2d(eval) -> SiLU."""
    Cout, Cin, kh, kw = weight.shape
    assert kh == kw, "square kernels only"
    k = kh
    pad = (k - 1) // 2

    # Fold eval-mode BN into per-channel scale/bias; fold the scale into the
    # weight matrix so only the bias add remains inside the kernel.
    scale = gamma / jnp.sqrt(var + BN_EPS)
    bias = beta - mean * scale
    w_mat = jnp.transpose(weight, (2, 3, 1, 0)).reshape(k * k * Cin, Cout)
    w_mat = w_mat * scale[None, :]

    x = jnp.transpose(x_nchw, (0, 2, 3, 1)).astype(jnp.bfloat16)  # NCHW->NHWC
    cols, (N, Ho, Wo) = im2col(x, k, stride, pad)
    y = matmul_bias_silu(cols, w_mat, bias, tile_m=tile_m, tile_k=tile_k)
    y = y.reshape(N, Ho, Wo, Cout)
    return jnp.transpose(y, (0, 3, 1, 2))                         # NHWC->NCHW


# --------------------------------------------------------------------------
# Plain-JAX f32 reference (for numerical validation)
# --------------------------------------------------------------------------
def base_conv_reference(x, weight, gamma, beta, mean, var, *, stride):
    k = weight.shape[-1]
    pad = (k - 1) // 2
    y = lax.conv_general_dilated(
        x, weight, window_strides=(stride, stride),
        padding=((pad, pad), (pad, pad)),
        dimension_numbers=("NCHW", "OIHW", "NCHW"))
    scale = (gamma / jnp.sqrt(var + BN_EPS)).reshape(1, -1, 1, 1)
    bias = (beta - mean * gamma / jnp.sqrt(var + BN_EPS)).reshape(1, -1, 1, 1)
    y = y * scale + bias
    return y * jax.nn.sigmoid(y)


if __name__ == "__main__":
    key = jax.random.PRNGKey(0)

    configs = [
        # (N, Cin, H, W, Cout, ksize, stride)
        (2, 4, 16, 16, 32, 3, 1),   # standard 3x3 BaseConv
        (2, 4, 16, 16, 40, 3, 2),   # strided downsample conv
        (2, 8, 16, 16, 16, 1, 1),   # 1x1 pointwise conv
    ]

    for idx, (N, Cin, H, W, Cout, ksize, stride) in enumerate(configs):
        kx, kw_, kg, kb, km, kv = jax.random.split(jax.random.fold_in(key, idx), 6)
        x = jax.random.normal(kx, (N, Cin, H, W), jnp.float32)
        weight = jax.random.normal(kw_, (Cout, Cin, ksize, ksize),
                                   jnp.float32) / math.sqrt(Cin * ksize * ksize)
        gamma = 1.0 + 0.1 * jax.random.normal(kg, (Cout,), jnp.float32)
        beta = 0.1 * jax.random.normal(kb, (Cout,), jnp.float32)
        mean = 0.1 * jax.random.normal(km, (Cout,), jnp.float32)
        var = jnp.abs(1.0 + 0.1 * jax.random.normal(kv, (Cout,), jnp.float32))

        fwd = jax.jit(partial(base_conv, stride=stride))
        y = jax.block_until_ready(fwd(x, weight, gamma, beta, mean, var))

        pad = (ksize - 1) // 2
        Ho = (H + 2 * pad - ksize) // stride + 1
        Wo = (W + 2 * pad - ksize) // stride + 1
        assert y.shape == (N, Cout, Ho, Wo), (y.shape, (N, Cout, Ho, Wo))
        assert bool(jnp.all(jnp.isfinite(y)))

        y_ref = base_conv_reference(x, weight, gamma, beta, mean, var,
                                    stride=stride)
        err = float(jnp.max(jnp.abs(y - y_ref)))
        assert err < 5e-2, f"config {idx}: max abs err {err}"

    print("KERNEL_OK")
</pallas_src>

<mosaic_0001>
module attributes {stable_mosaic.version = 11 : i64} {
  func.func @_conv_bn_silu_kernel(%arg0: i32, %arg1: i32, %arg2: memref<512x128xbf16, #tpu.memory_space<vmem>>, %arg3: memref<128x128xbf16, #tpu.memory_space<vmem>>, %arg4: memref<1x128xf32, #tpu.memory_space<vmem>>, %arg5: memref<512x128xf32, #tpu.memory_space<vmem>>, %arg6: memref<512x128xf32, #tpu.memory_space<vmem>>) attributes {dimension_semantics = [#tpu.dimension_semantics<parallel>, #tpu.dimension_semantics<arbitrary>], iteration_bounds = array<i64: 1, 1>, scalar_prefetch = 0 : i64, scratch_operands = 1 : i64, tpu.core_type = #tpu.core_type<tc>, window_params = [{transform_indices = @transform_0, window_bounds = array<i64: 512, 128>}, {transform_indices = @transform_1, window_bounds = array<i64: 128, 128>}, {pipeline_mode = #tpu.pipeline_mode<synchronous>, transform_indices = @transform_2, window_bounds = array<i64: 1, 128>}, {transform_indices = @transform_3, window_bounds = array<i64: 512, 128>}]} {
    %c0_i32 = arith.constant 0 : i32
    %0 = arith.cmpi eq, %arg1, %c0_i32 : i32
    %1 = arith.extui %0 : i1 to i32
    %c0_i32_0 = arith.constant 0 : i32
    %2 = arith.cmpi ne, %1, %c0_i32_0 : i32
    scf.if %2 {
      %cst_10 = arith.constant 0.000000e+00 : f32
      %12 = vector.broadcast %cst_10 : f32 to vector<512x128xf32>
      %c0_11 = arith.constant 0 : index
      %c0_12 = arith.constant 0 : index
      %13 = vector.load %arg6[%c0_11, %c0_12] : memref<512x128xf32, #tpu.memory_space<vmem>>, vector<512x128xf32>
      tpu.vector_store %arg6[%c0_11, %c0_12], %12 {strides = array<i32>} : memref<512x128xf32, #tpu.memory_space<vmem>>, vector<512x128xf32>,
    } else {
    }
    %c0 = arith.constant 0 : index
    %c0_1 = arith.constant 0 : index
    %3 = vector.load %arg6[%c0, %c0_1] : memref<512x128xf32, #tpu.memory_space<vmem>>, vector<512x128xf32>
    %c0_2 = arith.constant 0 : index
    %c0_3 = arith.constant 0 : index
    %4 = vector.load %arg2[%c0_2, %c0_3] : memref<512x128xbf16, #tpu.memory_space<vmem>>, vector<512x128xbf16>
    %c0_4 = arith.constant 0 : index
    %c0_5 = arith.constant 0 : index
    %5 = vector.load %arg3[%c0_4, %c0_5] : memref<128x128xbf16, #tpu.memory_space<vmem>>, vector<128x128xbf16>
    %cst = arith.constant dense<0.000000e+00> : vector<512x128xf32>
    %6 = tpu.matmul %4, %5, %cst {dimension_numbers = #tpu.dot_dimension_numbers<[1], [0], [0], [1], [0, 0, 1, 1], [], []>} : vector<512x128xbf16>, vector<128x128xbf16>, vector<512x128xf32> -> vector<512x128xf32>
    %7 = arith.addf %3, %6 : vector<512x128xf32>
    %c0_6 = arith.constant 0 : index
    %c0_7 = arith.constant 0 : index
    %8 = vector.load %arg6[%c0_6, %c0_7] : memref<512x128xf32, #tpu.memory_space<vmem>>, vector<512x128xf32>
    tpu.vector_store %arg6[%c0_6, %c0_7], %7 {strides = array<i32>} : memref<512x128xf32, #tpu.memory_space<vmem>>, vector<512x128xf32>,
    %c0_i32_8 = arith.constant 0 : i32
    %9 = arith.cmpi eq, %arg1, %c0_i32_8 : i32
    %10 = arith.extui %9 : i1 to i32
    %c0_i32_9 = arith.constant 0 : i32
    %11 = arith.cmpi ne, %10, %c0_i32_9 : i32
    scf.if %11 {
      %c0_10 = arith.constant 0 : index
      %c0_11 = arith.constant 0 : index
      %12 = vector.load %arg6[%c0_10, %c0_11] : memref<512x128xf32, #tpu.memory_space<vmem>>, vector<512x128xf32>
      %c0_12 = arith.constant 0 : index
      %c0_13 = arith.constant 0 : index
      %13 = vector.load %arg4[%c0_12, %c0_13] : memref<1x128xf32, #tpu.memory_space<vmem>>, vector<1x128xf32>
      %14 = vector.broadcast %13 : vector<1x128xf32> to vector<512x128xf32>
      %15 = arith.addf %12, %14 : vector<512x128xf32>
      %cst_14 = arith.constant 0.000000e+00 : f32
      %16 = vector.broadcast %cst_14 : f32 to vector<512x128xf32>
      %17 = arith.subf %16, %15 : vector<512x128xf32>
      %18 = math.exp %17 : vector<512x128xf32>
      %cst_15 = arith.constant 1.000000e+00 : f32
      %19 = vector.broadcast %cst_15 : f32 to vector<512x128xf32>
      %20 = arith.addf %19, %18 : vector<512x128xf32>
      %21 = tpu.reciprocal %20 {approx = true} : vector<512x128xf32> -> vector<512x128xf32>
      %22 = arith.mulf %15, %21 : vector<512x128xf32>
      %c0_16 = arith.constant 0 : index
      %c0_17 = arith.constant 0 : index
      %23 = vector.load %arg5[%c0_16, %c0_17] : memref<512x128xf32, #tpu.memory_space<vmem>>, vector<512x128xf32>
      tpu.vector_store %arg5[%c0_16, %c0_17], %22 {strides = array<i32>} : memref<512x128xf32, #tpu.memory_space<vmem>>, vector<512x128xf32>,
    } else {
    }
    return
  }
  func.func @transform_0(%arg0: i32, %arg1: i32) -> (i32, i32) {
    %c0_i32 = arith.constant 0 : i32
    return %arg0, %arg1 : i32, i32
  }
  func.func @transform_1(%arg0: i32, %arg1: i32) -> (i32, i32) {
    %c0_i32 = arith.constant 0 : i32
    %c0_i32_0 = arith.constant 0 : i32
    return %arg1, %c0_i32 : i32, i32
  }
  func.func @transform_2(%arg0: i32, %arg1: i32) -> (i32, i32) {
    %c0_i32 = arith.constant 0 : i32
    %c0_i32_0 = arith.constant 0 : i32
    %c0_i32_1 = arith.constant 0 : i32
    return %c0_i32, %c0_i32_0 : i32, i32
  }
  func.func @transform_3(%arg0: i32, %arg1: i32) -> (i32, i32) {
    %c0_i32 = arith.constant 0 : i32
    %c0_i32_0 = arith.constant 0 : i32
    return %arg0, %c0_i32 : i32, i32
  }
}

</mosaic_0001>

<bundles_post_ra>
// kernel: base_conv.1
= control target key start
LH: loop header
LB: loop body
LE: loop exit
PB: predicated region body
PF: predicated region fallthrough
CT: control target
= control target key end

     0   :  { %s2344_s0 = inlined_call_operand.vmem [shape: bf16[512,128], index: 0, kind: input, shape index: {}]   ;;  %s2345_s1 = inlined_call_operand.vmem [shape: bf16[128,128], index: 1, kind: input, shape index: {}]   ;;  %s2346_s2 = inlined_call_operand.vmem [shape: f32[1,128], index: 2, kind: input, shape index: {}]   ;;  %s2347_s3 = inlined_call_operand.hbm [shape: f32[512,128], index: 3, kind: output, shape index: {}]  }
   0x1   :  { %v1564_v0 = vld [vmem:[%s2345_s1 + $0x38] sm:$0xff]  ;;  %v1563_v1 = vld [vmem:[%s2345_s1 + $0x30] sm:$0xff] }
   0x2   :  { %467 = vmatpush.bf16.msra.mxu0 %v1564_v0  ;;  %1565 = vmatpush.bf16.msra.mxu1 %v1564_v0 }
   0x3   :  { %1566 = vmatpush.bf16.msra.mxu2 %v1564_v0  ;;  %1567 = vmatpush.bf16.msra.mxu3 %v1564_v0 }
   0x4   :  { %8 = vsyncpa [#allocation4], 0  ;;  %v1562_v2 = vld [vmem:[%s2345_s1 + $0x28] sm:$0xff]  ;;  %v1561_v3 = vld [vmem:[%s2345_s1 + $0x20] sm:$0xff]  ;;  %s1353_s14 = sshll.u32 %s2347_s3, 4  ;;  %s1877_s15 = smov 128   ;;  %s1354_s14 = int_to_ptr.hbm [resolvable:$true] %s1353_s14 }
   0x5   :  { %v1560_v4 = vld [vmem:[%s2345_s1 + $0x18] sm:$0xff]  ;;  %v1559_v5 = vld [vmem:[%s2345_s1 + $0x10] sm:$0xff]  ;;  %v1558_v6 = vld [vmem:[%s2345_s1 + $0x8] sm:$0xff]  ;;  %s1878_s16 = smov 8  }
   0x6   :  { %468 = vmatpush.bf16.msra.mxu0 %v1563_v1  ;;  %1568 = vmatpush.bf16.msra.mxu1 %v1563_v1  ;;  %v1557_v7 = vld [vmem:[%s2345_s1] sm:$0xff]  ;;  %v1526_v12 = vld [vmem:[%s2344_s0 + $0x8] sm:$0xff]  ;;  %v1527_v16 = vld [vmem:[%s2344_s0 + $0x10] sm:$0xff] }
   0x7   :  { %1569 = vmatpush.bf16.msra.mxu2 %v1563_v1  ;;  %1570 = vmatpush.bf16.msra.mxu3 %v1563_v1  ;;  %v1525_v8 = vld [vmem:[%s2344_s0] sm:$0xff]  ;;  %v1534_v13 = vld [vmem:[%s2344_s0 + $0x48] sm:$0xff]  ;;  %v1535_v17 = vld [vmem:[%s2344_s0 + $0x50] sm:$0xff] }
   0x8   :  { %v1533_v9 = vld [vmem:[%s2344_s0 + $0x40] sm:$0xff]  ;;  %v1542_v14 = vld [vmem:[%s2344_s0 + $0x88] sm:$0xff]  ;;  %v1543_v18 = vld [vmem:[%s2344_s0 + $0x90] sm:$0xff] }
   0x9   :  { %v1541_v10 = vld [vmem:[%s2344_s0 + $0x80] sm:$0xff]  ;;  %v1550_v15 = vld [vmem:[%s2344_s0 + $0xc8] sm:$0xff]  ;;  %v1551_v19 = vld [vmem:[%s2344_s0 + $0xd0] sm:$0xff] }
   0xa   :  { %469 = vmatpush.bf16.msra.mxu0 %v1562_v2  ;;  %1571 = vmatpush.bf16.msra.mxu1 %v1562_v2  ;;  %v1549_v11 = vld [vmem:[%s2344_s0 + $0xc0] sm:$0xff]  ;;  %v1528_v20 = vld [vmem:[%s2344_s0 + $0x18] sm:$0xff]  ;;  %v1530_v28 = vld [vmem:[%s2344_s0 + $0x28] sm:$0xff] }
   0xb   :  { %1572 = vmatpush.bf16.msra.mxu2 %v1562_v2  ;;  %1573 = vmatpush.bf16.msra.mxu3 %v1562_v2  ;;  %v1536_v21 = vld [vmem:[%s2344_s0 + $0x58] sm:$0xff]  ;;  %v1529_v24 = vld [vmem:[%s2344_s0 + $0x20] sm:$0xff]  ;;  %v1538_v29 = vld [vmem:[%s2344_s0 + $0x68] sm:$0xff] }
   0xc   :  { %v1544_v22 = vld [vmem:[%s2344_s0 + $0x98] sm:$0xff]  ;;  %v1537_v25 = vld [vmem:[%s2344_s0 + $0x60] sm:$0xff]  ;;  %v1546_v30 = vld [vmem:[%s2344_s0 + $0xa8] sm:$0xff] }
   0xd   :  { %v1552_v23 = vld [vmem:[%s2344_s0 + $0xd8] sm:$0xff]  ;;  %v1545_v26 = vld [vmem:[%s2344_s0 + $0xa0] sm:$0xff]  ;;  %v1554_v31 = vld [vmem:[%s2344_s0 + $0xe8] sm:$0xff] }
   0xe   :  { %470 = vmatpush.bf16.msra.mxu0 %v1561_v3  ;;  %1574 = vmatpush.bf16.msra.mxu1 %v1561_v3  ;;  %v1553_v27 = vld [vmem:[%s2344_s0 + $0xe0] sm:$0xff]  ;;  %v1531_v32 = vld [vmem:[%s2344_s0 + $0x30] sm:$0xff]  ;;  %v1532_v36 = vld [vmem:[%s2344_s0 + $0x38] sm:$0xff] }
   0xf   :  { %1575 = vmatpush.bf16.msra.mxu2 %v1561_v3  ;;  %1576 = vmatpush.bf16.msra.mxu3 %v1561_v3  ;;  %v1539_v33 = vld [vmem:[%s2344_s0 + $0x70] sm:$0xff]  ;;  %v1540_v37 = vld [vmem:[%s2344_s0 + $0x78] sm:$0xff]  ;;  %v2022_v40 = vld [vmem:[%s2346_s2] ss:$0 sm:$0xff] }
  0x10   :  { %v1547_v34 = vld [vmem:[%s2344_s0 + $0xb0] sm:$0xff]  ;;  %v1548_v38 = vld [vmem:[%s2344_s0 + $0xb8] sm:$0xff] }
  0x11   :  { %v1555_v35 = vld [vmem:[%s2344_s0 + $0xf0] sm:$0xff]  ;;  %v1556_v39 = vld [vmem:[%s2344_s0 + $0xf8] sm:$0xff] }
  0x12   :  { %471 = vmatpush.bf16.msra.mxu0 %v1560_v4  ;;  %1577 = vmatpush.bf16.msra.mxu1 %v1560_v4 }
  0x13   :  { %1578 = vmatpush.bf16.msra.mxu2 %v1560_v4  ;;  %1579 = vmatpush.bf16.msra.mxu3 %v1560_v4 }
  0x16   :  { %472 = vmatpush.bf16.msra.mxu0 %v1559_v5  ;;  %1580 = vmatpush.bf16.msra.mxu1 %v1559_v5 }
  0x17   :  { %1581 = vmatpush.bf16.msra.mxu2 %v1559_v5  ;;  %1582 = vmatpush.bf16.msra.mxu3 %v1559_v5 }
  0x1a   :  { %473 = vmatpush.bf16.msra.mxu0 %v1558_v6  ;;  %1583 = vmatpush.bf16.msra.mxu1 %v1558_v6 }
  0x1b   :  { %1584 = vmatpush.bf16.msra.mxu2 %v1558_v6  ;;  %1585 = vmatpush.bf16.msra.mxu3 %v1558_v6 }
  0x1e   :  { %474 = vmatpush.bf16.msra.mxu0 %v1557_v7  ;;  %1586 = vmatpush.bf16.msra.mxu1 %v1557_v7 }
  0x1f   :  { %1587 = vmatpush.bf16.msra.mxu2 %v1557_v7  ;;  %1588 = vmatpush.bf16.msra.mxu3 %v1557_v7 }
  0x21   :  { %475 = vmatmul.bf16.vlgmr.msra.gmra.mxu0 %v1525_v8  ;;  %515 = vmatmul.bf16.vlgmr.msra.gmra.mxu1 %v1533_v9 }
  0x22   :  { %555 = vmatmul.bf16.vlgmr.msra.gmra.mxu2 %v1541_v10  ;;  %595 = vmatmul.bf16.vlgmr.msra.gmra.mxu3 %v1549_v11 }
  0x31   :  { %480 = vmatmul.bf16.gmra.mxu0 %v1526_v12  ;;  %520 = vmatmul.bf16.gmra.mxu1 %v1534_v13 }
  0x32   :  { %560 = vmatmul.bf16.gmra.mxu2 %v1542_v14  ;;  %600 = vmatmul.bf16.gmra.mxu3 %v1550_v15 }
  0x41   :  { %485 = vmatmul.bf16.gmra.mxu0 %v1527_v16  ;;  %525 = vmatmul.bf16.gmra.mxu1 %v1535_v17 }
  0x42   :  { %565 = vmatmul.bf16.gmra.mxu2 %v1543_v18  ;;  %605 = vmatmul.bf16.gmra.mxu3 %v1551_v19 }
  0x51   :  { %490 = vmatmul.bf16.gmra.mxu0 %v1528_v20  ;;  %530 = vmatmul.bf16.gmra.mxu1 %v1536_v21 }
  0x52   :  { %570 = vmatmul.bf16.gmra.mxu2 %v1544_v22  ;;  %610 = vmatmul.bf16.gmra.mxu3 %v1552_v23 }
  0x61   :  { %495 = vmatmul.bf16.gmra.mxu0 %v1529_v24  ;;  %535 = vmatmul.bf16.gmra.mxu1 %v1537_v25 }
  0x62   :  { %575 = vmatmul.bf16.gmra.mxu2 %v1545_v26  ;;  %615 = vmatmul.bf16.gmra.mxu3 %v1553_v27 }
  0x71   :  { %500 = vmatmul.bf16.gmra.mxu0 %v1530_v28  ;;  %540 = vmatmul.bf16.gmra.mxu1 %v1538_v29 }
  0x72   :  { %580 = vmatmul.bf16.gmra.mxu2 %v1546_v30  ;;  %620 = vmatmul.bf16.gmra.mxu3 %v1554_v31 }
  0x81   :  { %505 = vmatmul.bf16.gmra.mxu0 %v1531_v32  ;;  %545 = vmatmul.bf16.gmra.mxu1 %v1539_v33 }
  0x82   :  { %585 = vmatmul.bf16.gmra.mxu2 %v1547_v34  ;;  %625 = vmatmul.bf16.gmra.mxu3 %v1555_v35 }
  0x91   :  { %510 = vmatmul.bf16.gmra.mxu0 %v1532_v36  ;;  %550 = vmatmul.bf16.gmra.mxu1 %v1540_v37 }
  0x92   :  { %590 = vmatmul.bf16.gmra.mxu2 %v1548_v38  ;;  %630 = vmatmul.bf16.gmra.mxu3 %v1556_v39 }
  0x9e   :  { %v476_v41 = vpop.f32.mrf.mxu0  ;;  %v516_v42 = vpop.f32.mrf.mxu1 }
  0x9f   :  { %v835_v43 = vadd.f32 %v2022_v40, %v476_v41  ;;  %v851_v44 = vadd.f32 %v2022_v40, %v516_v42 }
  0xa1   :  { %v899_v45 = vsub.f32 0.0, %v835_v43  ;;  %v915_v46 = vsub.f32 0.0, %v851_v44 }
  0xa3   :  { %v963_v47 = vmul.f32 1.442695, %v899_v45  ;;  %v995_v48 = vmul.f32 1.442695, %v915_v46 }
  0xa5   :  { %1593 = vpow2.f32 %v963_v47  ;;  %v556_v49 = vpop.f32.mrf.mxu2  ;;  %v596_v50 = vpop.f32.mrf.mxu3 }
  0xa6   :  { %1595 = vpow2.f32 %v995_v48  ;;  %v2027_v51 = vadd.f32 %v2022_v40, %v556_v49  ;;  %v2030_v52 = vadd.f32 %v2022_v40, %v596_v50  ;;  %v478_v53 = vpop.f32.mrf.mxu0  ;;  %v518_v54 = vpop.f32.mrf.mxu1 }
  0xa7   :  { %v2033_v55 = vadd.f32 %v2022_v40, %v478_v53  ;;  %v2036_v56 = vadd.f32 %v2022_v40, %v518_v54 }
  0xa8   :  { %v931_v57 = vsub.f32 0.0, %v2027_v51  ;;  %v947_v58 = vsub.f32 0.0, %v2030_v52 }
  0xa9   :  { %v900_v59 = vsub.f32 0.0, %v2033_v55  ;;  %v916_v60 = vsub.f32 0.0, %v2036_v56 }
  0xaa   :  { %v1027_v61 = vmul.f32 1.442695, %v931_v57  ;;  %v1059_v62 = vmul.f32 1.442695, %v947_v58 }
  0xab   :  { %v1594_v63 = vpop.eup %1593  ;;  %v965_v2 = vmul.f32 1.442695, %v900_v59  ;;  %v997_v4 = vmul.f32 1.442695, %v916_v60 }
  0xac   :  { %v1596_v0 = vpop.eup %1595  ;;  %v1091_v1 = vadd.f32 1.0, %v1594_v63  ;;  %1597 = vpow2.f32 %v1027_v61 }
  0xad   :  { %v1107_v3 = vadd.f32 1.0, %v1596_v0  ;;  %1599 = vpow2.f32 %v1059_v62  ;;  %v558_v5 = vpop.f32.mrf.mxu2  ;;  %v598_v6 = vpop.f32.mrf.mxu3 }
  0xae   :  { %1601 = vrcp.f32 %v1091_v1  ;;  %v2043_v7 = vadd.f32 %v2022_v40, %v558_v5  ;;  %v2046_v8 = vadd.f32 %v2022_v40, %v598_v6  ;;  %v481_v9 = vpop.f32.mrf.mxu0  ;;  %v521_v10 = vpop.f32.mrf.mxu1 }
  0xaf   :  { %1603 = vrcp.f32 %v1107_v3  ;;  %v2049_v11 = vadd.f32 %v2022_v40, %v481_v9  ;;  %v2052_v12 = vadd.f32 %v2022_v40, %v521_v10 }
  0xb0   :  { %1605 = vpow2.f32 %v965_v2  ;;  %v932_v13 = vsub.f32 0.0, %v2043_v7  ;;  %v948_v14 = vsub.f32 0.0, %v2046_v8 }
  0xb1   :  { %1607 = vpow2.f32 %v997_v4  ;;  %v901_v15 = vsub.f32 0.0, %v2049_v11  ;;  %v917_v16 = vsub.f32 0.0, %v2052_v12 }
  0xb2   :  { %v1598_v17 = vpop.eup %1597  ;;  %v1029_v18 = vmul.f32 1.442695, %v932_v13  ;;  %v1061_v21 = vmul.f32 1.442695, %v948_v14 }
  0xb3   :  { %v1600_v19 = vpop.eup %1599  ;;  %v1123_v20 = vadd.f32 1.0, %v1598_v17  ;;  %v967_v24 = vmul.f32 1.442695, %v901_v15  ;;  %v999_v27 = vmul.f32 1.442695, %v917_v16 }
  0xb4   :  { %v1602_v22 = vpop.eup %1601  ;;  %v1139_v23 = vadd.f32 1.0, %v1600_v19  ;;  %1609 = vpow2.f32 %v1029_v18 }
  0xb5   :  { %v1604_v25 = vpop.eup %1603  ;;  %v1219_v26 = vmul.f32 %v1602_v22, %v835_v43  ;;  %1611 = vrcp.f32 %v1123_v20  ;;  %v561_v28 = vpop.f32.mrf.mxu2 }
  0xb6   :  { %v601_v29 = vpop.f32.mrf.mxu3  ;;  %v1606_v30 = vpop.eup %1605  ;;  %v1235_v31 = vmul.f32 %v1604_v25, %v851_v44  ;;  %1613 = vrcp.f32 %v1139_v23  ;;  %v2059_v32 = vadd.f32 %v2022_v40, %v561_v28 }
  0xb7   :  { %v2062_v33 = vadd.f32 %v2022_v40, %v601_v29  ;;  %v483_v34 = vpop.f32.mrf.mxu0  ;;  %v523_v35 = vpop.f32.mrf.mxu1  ;;  %1283 = vst [vmem:[#allocation3] sm:$0xff] %v1219_v26  ;;  %v1092_v37 = vadd.f32 1.0, %v1606_v30  ;;  %1615 = vpow2.f32 %v1061_v21 }
  0xb8   :  { %v1608_v36 = vpop.eup %1607  ;;  %v2065_v38 = vadd.f32 %v2022_v40, %v483_v34  ;;  %v2068_v39 = vadd.f32 %v2022_v40, %v523_v35  ;;  %1299 = vst [vmem:[#allocation3 + $0x80] sm:$0xff] %v1235_v31  ;;  %1617 = vpow2.f32 %v967_v24  ;;  %v933_v42 = vsub.f32 0.0, %v2059_v32 }
  0xb9   :  { %v1108_v41 = vadd.f32 1.0, %v1608_v36  ;;  %v949_v43 = vsub.f32 0.0, %v2062_v33  ;;  %1619 = vrcp.f32 %v1092_v37 }
  0xba   :  { %v902_v44 = vsub.f32 0.0, %v2065_v38  ;;  %v918_v45 = vsub.f32 0.0, %v2068_v39  ;;  %v1610_v46 = vpop.eup %1609  ;;  %v1031_v47 = vmul.f32 1.442695, %v933_v42 }
  0xbb   :  { %1621 = vrcp.f32 %v1108_v41  ;;  %v1063_v48 = vmul.f32 1.442695, %v949_v43  ;;  %v1612_v49 = vpop.eup %1611  ;;  %v1124_v50 = vadd.f32 1.0, %v1610_v46 }
  0xbc   :  { %1623 = vpow2.f32 %v999_v27  ;;  %v969_v53 = vmul.f32 1.442695, %v902_v44  ;;  %v1614_v54 = vpop.eup %1613  ;;  %v1251_v57 = vmul.f32 %v1612_v49, %v2027_v51  ;;  %v1001_v60 = vmul.f32 1.442695, %v918_v45 }
  0xbd   :  { %1625 = vpow2.f32 %v1031_v47  ;;  %v1616_v58 = vpop.eup %1615  ;;  %v1267_v59 = vmul.f32 %v1614_v54, %v2030_v52  ;;  %v563_v61 = vpop.f32.mrf.mxu2 }
  0xbe   :  { %1627 = vrcp.f32 %v1124_v50  ;;  %v603_v62 = vpop.f32.mrf.mxu3  ;;  %v1618_v63 = vpop.eup %1617  ;;  %1315 = vst [vmem:[#allocation3 + $0x100] sm:$0xff] %v1251_v57  ;;  %v1140_v0 = vadd.f32 1.0, %v1616_v58  ;;  %v2077_v1 = vadd.f32 %v2022_v40, %v563_v61 }
  0xbf   :  { %1629 = vpow2.f32 %v1063_v48  ;;  %v2080_v2 = vadd.f32 %v2022_v40, %v603_v62  ;;  %v486_v3 = vpop.f32.mrf.mxu0  ;;  %v526_v51 = vpop.f32.mrf.mxu1  ;;  %1331 = vst [vmem:[#allocation3 + $0x180] sm:$0xff] %v1267_v59  ;;  %v1093_v5 = vadd.f32 1.0, %v1618_v63 }
  0xc0   :  { %v1620_v4 = vpop.eup %1619  ;;  %1631 = vpow2.f32 %v969_v53  ;;  %v2083_v52 = vadd.f32 %v2022_v40, %v486_v3  ;;  %v2086_v6 = vadd.f32 %v2022_v40, %v526_v51  ;;  %v934_v13 = vsub.f32 0.0, %v2077_v1 }
  0xc1   :  { %v1622_v9 = vpop.eup %1621  ;;  %v1220_v10 = vmul.f32 %v1620_v4, %v2033_v55  ;;  %1633 = vrcp.f32 %v1140_v0  ;;  %v950_v14 = vsub.f32 0.0, %v2080_v2 }
  0xc2   :  { %v1624_v15 = vpop.eup %1623  ;;  %v1236_v16 = vmul.f32 %v1622_v9, %v2036_v56  ;;  %1635 = vrcp.f32 %v1093_v5  ;;  %v903_v17 = vsub.f32 0.0, %v2083_v52  ;;  %v919_v18 = vsub.f32 0.0, %v2086_v6 }
  0xc3   :  { %v1626_v19 = vpop.eup %1625  ;;  %1284 = vst [vmem:[#allocation3 + $0x8] sm:$0xff] %v1220_v10  ;;  %v1109_v20 = vadd.f32 1.0, %v1624_v15  ;;  %1637 = vpow2.f32 %v1001_v60  ;;  %v1033_v21 = vmul.f32 1.442695, %v934_v13  ;;  %v1065_v25 = vmul.f32 1.442695, %v950_v14 }
  0xc4   :  { %v1628_v22 = vpop.eup %1627  ;;  %1300 = vst [vmem:[#allocation3 + $0x88] sm:$0xff] %v1236_v16  ;;  %v1125_v55 = vadd.f32 1.0, %v1626_v19  ;;  %v971_v27 = vmul.f32 1.442695, %v903_v17  ;;  %v1003_v28 = vmul.f32 1.442695, %v919_v18 }
  0xc5   :  { %v1630_v23 = vpop.eup %1629  ;;  %v1252_v24 = vmul.f32 %v1628_v22, %v2043_v7  ;;  %1639 = vrcp.f32 %v1109_v20  ;;  %v566_v29 = vpop.f32.mrf.mxu2 }
  0xc6   :  { %v1632_v26 = vpop.eup %1631  ;;  %1641 = vrcp.f32 %v1125_v55  ;;  %v1141_v56 = vadd.f32 1.0, %v1630_v23  ;;  %v606_v30 = vpop.f32.mrf.mxu3  ;;  %v2096_v35 = vadd.f32 %v2022_v40, %v566_v29 }
  0xc7   :  { %v1634_v31 = vpop.eup %1633  ;;  %1316 = vst [vmem:[#allocation3 + $0x108] sm:$0xff] %v1252_v24  ;;  %v1094_v34 = vadd.f32 1.0, %v1632_v26  ;;  %1643 = vpow2.f32 %v1033_v21  ;;  %v2099_v36 = vadd.f32 %v2022_v40, %v606_v30  ;;  %v488_v7 = vpop.f32.mrf.mxu0 }
  0xc8   :  { %v528_v37 = vpop.f32.mrf.mxu1  ;;  %v1636_v41 = vpop.eup %1635  ;;  %v1268_v42 = vmul.f32 %v1634_v31, %v2046_v8  ;;  %1645 = vrcp.f32 %v1141_v56  ;;  %v2103_v43 = vadd.f32 %v2022_v40, %v488_v7  ;;  %v935_v47 = vsub.f32 0.0, %v2096_v35 }
  0xc9   :  { %v2106_v44 = vadd.f32 %v2022_v40, %v528_v37  ;;  %v1638_v45 = vpop.eup %1637  ;;  %v1221_v46 = vmul.f32 %v1636_v41, %v2049_v11  ;;  %1647 = vrcp.f32 %v1094_v34  ;;  %v951_v48 = vsub.f32 0.0, %v2099_v36 }
  0xca   :  { %1332 = vst [vmem:[#allocation3 + $0x188] sm:$0xff] %v1268_v42  ;;  %v1110_v49 = vadd.f32 1.0, %v1638_v45  ;;  %1649 = vpow2.f32 %v1065_v25  ;;  %v904_v8 = vsub.f32 0.0, %v2103_v43  ;;  %v1035_v54 = vmul.f32 1.442695, %v935_v47 }
  0xcb   :  { %v920_v50 = vsub.f32 0.0, %v2106_v44  ;;  %v1640_v53 = vpop.eup %1639  ;;  %1285 = vst [vmem:[#allocation3 + $0x10] sm:$0xff] %v1221_v46  ;;  %1651 = vpow2.f32 %v971_v27  ;;  %v1067_v57 = vmul.f32 1.442695, %v951_v48 }
  0xcc   :  { %v1642_v58 = vpop.eup %1641  ;;  %v1237_v11 = vmul.f32 %v1640_v53, %v2052_v12  ;;  %1653 = vrcp.f32 %v1110_v49  ;;  %v973_v61 = vmul.f32 1.442695, %v904_v8 }
  0xcd   :  { %v1644_v59 = vpop.eup %1643  ;;  %v1253_v60 = vmul.f32 %v1642_v58, %v2059_v32  ;;  %1655 = vpow2.f32 %v1003_v28  ;;  %v1005_v0 = vmul.f32 1.442695, %v920_v50  ;;  %v568_v3 = vpop.f32.mrf.mxu2 }
  0xce   :  { %v1646_v62 = vpop.eup %1645  ;;  %1301 = vst [vmem:[#allocation3 + $0x90] sm:$0xff] %v1237_v11  ;;  %v1126_v63 = vadd.f32 1.0, %v1644_v59  ;;  %1657 = vpow2.f32 %v1035_v54  ;;  %v608_v51 = vpop.f32.mrf.mxu3  ;;  %v2117_v12 = vadd.f32 %v2022_v40, %v568_v3 }
  0xcf   :  { %v1648_v4 = vpop.eup %1647  ;;  %1317 = vst [vmem:[#allocation3 + $0x110] sm:$0xff] %v1253_v60  ;;  %v1269_v5 = vmul.f32 %v1646_v62, %v2062_v33  ;;  %1659 = vpow2.f32 %v1067_v57  ;;  %v2120_v9 = vadd.f32 %v2022_v40, %v608_v51  ;;  %v491_v32 = vpop.f32.mrf.mxu0 }
  0xd0   :  { %v531_v10 = vpop.f32.mrf.mxu1  ;;  %v1650_v13 = vpop.eup %1649  ;;  %v1222_v14 = vmul.f32 %v1648_v4, %v2065_v38  ;;  %1661 = vrcp.f32 %v1126_v63  ;;  %v2124_v15 = vadd.f32 %v2022_v40, %v491_v32  ;;  %v936_v18 = vsub.f32 0.0, %v2117_v12 }
  0xd1   :  { %v2127_v16 = vadd.f32 %v2022_v40, %v531_v10  ;;  %v1652_v33 = vpop.eup %1651  ;;  %1333 = vst [vmem:[#allocation3 + $0x190] sm:$0xff] %v1269_v5  ;;  %v1142_v17 = vadd.f32 1.0, %v1650_v13  ;;  %1663 = vpow2.f32 %v973_v61  ;;  %v952_v19 = vsub.f32 0.0, %v2120_v9 }
  0xd2   :  { %v1654_v20 = vpop.eup %1653  ;;  %1286 = vst [vmem:[#allocation3 + $0x18] sm:$0xff] %v1222_v14  ;;  %v1095_v21 = vadd.f32 1.0, %v1652_v33  ;;  %1665 = vpow2.f32 %v1005_v0  ;;  %v905_v38 = vsub.f32 0.0, %v2124_v15  ;;  %v1037_v24 = vmul.f32 1.442695, %v936_v18 }
  0xd3   :  { %v921_v22 = vsub.f32 0.0, %v2127_v16  ;;  %v1656_v55 = vpop.eup %1655  ;;  %v1238_v23 = vmul.f32 %v1654_v20, %v2068_v39  ;;  %1667 = vrcp.f32 %v1142_v17  ;;  %v1069_v28 = vmul.f32 1.442695, %v952_v19 }
  0xd4   :  { %v1658_v25 = vpop.eup %1657  ;;  %1669 = vrcp.f32 %v1095_v21  ;;  %v1111_v26 = vadd.f32 1.0, %v1656_v55  ;;  %v975_v31 = vmul.f32 1.442695, %v905_v38 }
  0xd5   :  { %v1660_v56 = vpop.eup %1659  ;;  %1302 = vst [vmem:[#allocation3 + $0x98] sm:$0xff] %v1238_v23  ;;  %v1127_v27 = vadd.f32 1.0, %v1658_v25  ;;  %1671 = vpow2.f32 %v1037_v24  ;;  %v1007_v34 = vmul.f32 1.442695, %v921_v22  ;;  %v571_v7 = vpop.f32.mrf.mxu2 }
  0xd6   :  { %v1662_v29 = vpop.eup %1661  ;;  %1673 = vrcp.f32 %v1111_v26  ;;  %v1143_v30 = vadd.f32 1.0, %v1660_v56  ;;  %v611_v37 = vpop.f32.mrf.mxu3  ;;  %v2136_v42 = vadd.f32 %v2022_v40, %v571_v7 }
  0xd7   :  { %v1664_v41 = vpop.eup %1663  ;;  %v1254_v39 = vmul.f32 %v1662_v29, %v2077_v1  ;;  %1675 = vrcp.f32 %v1127_v27  ;;  %v2139_v45 = vadd.f32 %v2022_v40, %v611_v37  ;;  %v493_v46 = vpop.f32.mrf.mxu0 }
  0xd8   :  { %v533_v47 = vpop.f32.mrf.mxu1  ;;  %v1666_v48 = vpop.eup %1665  ;;  %1677 = vrcp.f32 %v1143_v30  ;;  %v1096_v49 = vadd.f32 1.0, %v1664_v41  ;;  %v2142_v8 = vadd.f32 %v2022_v40, %v493_v46  ;;  %v937_v54 = vsub.f32 0.0, %v2136_v42 }
  0xd9   :  { %v2145_v50 = vadd.f32 %v2022_v40, %v533_v47  ;;  %v1668_v53 = vpop.eup %1667  ;;  %1318 = vst [vmem:[#allocation3 + $0x118] sm:$0xff] %v1254_v39  ;;  %v1112_v1 = vadd.f32 1.0, %v1666_v48  ;;  %1679 = vpow2.f32 %v1069_v28  ;;  %v953_v57 = vsub.f32 0.0, %v2139_v45 }
  0xda   :  { %v1670_v58 = vpop.eup %1669  ;;  %v1270_v11 = vmul.f32 %v1668_v53, %v2080_v2  ;;  %1681 = vrcp.f32 %v1096_v49  ;;  %v906_v59 = vsub.f32 0.0, %v2142_v8  ;;  %v1039_v63 = vmul.f32 1.442695, %v937_v54 }
  0xdb   :  { %v922_v60 = vsub.f32 0.0, %v2145_v50  ;;  %v1672_v61 = vpop.eup %1671  ;;  %v1223_v62 = vmul.f32 %v1670_v58, %v2083_v52  ;;  %1683 = vrcp.f32 %v1112_v1  ;;  %v1071_v51 = vmul.f32 1.442695, %v953_v57 }
  0xdc   :  { %v1674_v0 = vpop.eup %1673  ;;  %1334 = vst [vmem:[#allocation3 + $0x198] sm:$0xff] %v1270_v11  ;;  %v1128_v3 = vadd.f32 1.0, %v1672_v61  ;;  %1685 = vpow2.f32 %v975_v31  ;;  %v977_v2 = vmul.f32 1.442695, %v906_v59 }
  0xdd   :  { %v1676_v4 = vpop.eup %1675  ;;  %1287 = vst [vmem:[#allocation3 + $0x20] sm:$0xff] %v1223_v62  ;;  %v1239_v5 = vmul.f32 %v1674_v0, %v2086_v6  ;;  %1687 = vpow2.f32 %v1007_v34  ;;  %v1009_v13 = vmul.f32 1.442695, %v922_v60  ;;  %v573_v14 = vpop.f32.mrf.mxu2 }
  0xde   :  { %v1678_v32 = vpop.eup %1677  ;;  %v1255_v10 = vmul.f32 %v1676_v4, %v2096_v35  ;;  %1689 = vrcp.f32 %v1128_v3  ;;  %v613_v52 = vpop.f32.mrf.mxu3  ;;  %v2157_v18 = vadd.f32 %v2022_v40, %v573_v14 }
  0xdf   :  { %v1680_v33 = vpop.eup %1679  ;;  %1303 = vst [vmem:[#allocation3 + $0xa0] sm:$0xff] %v1239_v5  ;;  %v1271_v17 = vmul.f32 %v1678_v32, %v2099_v36  ;;  %1691 = vpow2.f32 %v1039_v63  ;;  %v2160_v19 = vadd.f32 %v2022_v40, %v613_v52  ;;  %v496_v6 = vpop.f32.mrf.mxu0 }
  0xe0   :  { %v536_v20 = vpop.f32.mrf.mxu1  ;;  %v1682_v21 = vpop.eup %1681  ;;  %1319 = vst [vmem:[#allocation3 + $0x120] sm:$0xff] %v1255_v10  ;;  %v1144_v35 = vadd.f32 1.0, %v1680_v33  ;;  %1693 = vpow2.f32 %v1071_v51  ;;  %v2163_v38 = vadd.f32 %v2022_v40, %v496_v6  ;;  %v938_v23 = vsub.f32 0.0, %v2157_v18 }
  0xe1   :  { %v2166_v22 = vadd.f32 %v2022_v40, %v536_v20  ;;  %v1684_v36 = vpop.eup %1683  ;;  %1335 = vst [vmem:[#allocation3 + $0x1a0] sm:$0xff] %v1271_v17  ;;  %v1224_v55 = vmul.f32 %v1682_v21, %v2103_v43  ;;  %1695 = vpow2.f32 %v977_v2  ;;  %v954_v24 = vsub.f32 0.0, %v2160_v19 }
  0xe2   :  { %v1686_v25 = vpop.eup %1685  ;;  %v1240_v26 = vmul.f32 %v1684_v36, %v2106_v44  ;;  %1697 = vrcp.f32 %v1144_v35  ;;  %v907_v56 = vsub.f32 0.0, %v2163_v38  ;;  %v1041_v30 = vmul.f32 1.442695, %v938_v23 }
  0xe3   :  { %v923_v27 = vsub.f32 0.0, %v2166_v22  ;;  %v1688_v28 = vpop.eup %1687  ;;  %1288 = vst [vmem:[#allocation3 + $0x28] sm:$0xff] %v1224_v55  ;;  %v1097_v29 = vadd.f32 1.0, %v1686_v25  ;;  %1699 = vpow2.f32 %v1009_v13  ;;  %v1073_v37 = vmul.f32 1.442695, %v954_v24 }
  0xe4   :  { %v1690_v31 = vpop.eup %1689  ;;  %1304 = vst [vmem:[#allocation3 + $0xa8] sm:$0xff] %v1240_v26  ;;  %v1113_v43 = vadd.f32 1.0, %v1688_v28  ;;  %v979_v39 = vmul.f32 1.442695, %v907_v56 }
  0xe5   :  { %v1692_v34 = vpop.eup %1691  ;;  %v1256_v7 = vmul.f32 %v1690_v31, %v2117_v12  ;;  %1701 = vrcp.f32 %v1097_v29  ;;  %v1011_v46 = vmul.f32 1.442695, %v923_v27  ;;  %v576_v47 = vpop.f32.mrf.mxu2 }
  0xe6   :  { %v1694_v41 = vpop.eup %1693  ;;  %1703 = vrcp.f32 %v1113_v43  ;;  %v1129_v44 = vadd.f32 1.0, %v1692_v34  ;;  %v616_v48 = vpop.f32.mrf.mxu3  ;;  %v2176_v1 = vadd.f32 %v2022_v40, %v576_v47 }
  0xe7   :  { %v1696_v49 = vpop.eup %1695  ;;  %1320 = vst [vmem:[#allocation3 + $0x128] sm:$0xff] %v1256_v7  ;;  %v1145_v53 = vadd.f32 1.0, %v1694_v41  ;;  %1705 = vpow2.f32 %v1041_v30  ;;  %v2179_v54 = vadd.f32 %v2022_v40, %v616_v48  ;;  %v498_v12 = vpop.f32.mrf.mxu0 }
  0xe8   :  { %v538_v57 = vpop.f32.mrf.mxu1  ;;  %v1698_v58 = vpop.eup %1697  ;;  %1707 = vrcp.f32 %v1129_v44  ;;  %v1098_v11 = vadd.f32 1.0, %v1696_v49  ;;  %v2182_v59 = vadd.f32 %v2022_v40, %v498_v12  ;;  %v939_v63 = vsub.f32 0.0, %v2176_v1 }
  0xe9   :  { %v2185_v60 = vadd.f32 %v2022_v40, %v538_v57  ;;  %v1700_v61 = vpop.eup %1699  ;;  %v1272_v62 = vmul.f32 %v1698_v58, %v2120_v9  ;;  %1709 = vrcp.f32 %v1145_v53  ;;  %v955_v0 = vsub.f32 0.0, %v2179_v54 }
  0xea   :  { %1711 = vrcp.f32 %v1098_v11  ;;  %v1114_v3 = vadd.f32 1.0, %v1700_v61  ;;  %v908_v51 = vsub.f32 0.0, %v2182_v59  ;;  %v1043_v2 = vmul.f32 1.442695, %v939_v63 }
  0xeb   :  { %v924_v4 = vsub.f32 0.0, %v2185_v60  ;;  %v1702_v5 = vpop.eup %1701  ;;  %1336 = vst [vmem:[#allocation3 + $0x1a8] sm:$0xff] %v1272_v62  ;;  %1713 = vpow2.f32 %v1073_v37  ;;  %v1075_v14 = vmul.f32 1.442695, %v955_v0 }
  0xec   :  { %v1704_v32 = vpop.eup %1703  ;;  %v1225_v10 = vmul.f32 %v1702_v5, %v2124_v15  ;;  %1715 = vrcp.f32 %v1114_v3  ;;  %v981_v17 = vmul.f32 1.442695, %v908_v51 }
  0xed   :  { %v1706_v9 = vpop.eup %1705  ;;  %v1241_v13 = vmul.f32 %v1704_v32, %v2127_v16  ;;  %1717 = vpow2.f32 %v979_v39  ;;  %v1013_v6 = vmul.f32 1.442695, %v924_v4  ;;  %v578_v20 = vpop.f32.mrf.mxu2 }
  0xee   :  { %v1708_v52 = vpop.eup %1707  ;;  %1289 = vst [vmem:[#allocation3 + $0x30] sm:$0xff] %v1225_v10  ;;  %v1130_v33 = vadd.f32 1.0, %v1706_v9  ;;  %1719 = vpow2.f32 %v1011_v46  ;;  %v618_v21 = vpop.f32.mrf.mxu3  ;;  %v2196_v15 = vadd.f32 %v2022_v40, %v578_v20 }
  0xef   :  { %v1710_v35 = vpop.eup %1709  ;;  %1305 = vst [vmem:[#allocation3 + $0xb0] sm:$0xff] %v1241_v13  ;;  %v1257_v36 = vmul.f32 %v1708_v52, %v2136_v42  ;;  %1721 = vpow2.f32 %v1043_v2  ;;  %v2199_v16 = vadd.f32 %v2022_v40, %v618_v21  ;;  %v501_v55 = vpop.f32.mrf.mxu0 }
  0xf0   :  { %v541_v23 = vpop.f32.mrf.mxu1  ;;  %v1712_v24 = vpop.eup %1711  ;;  %v1273_v25 = vmul.f32 %v1710_v35, %v2139_v45  ;;  %1723 = vrcp.f32 %v1130_v33  ;;  %v2203_v26 = vadd.f32 %v2022_v40, %v501_v55  ;;  %v940_v27 = vsub.f32 0.0, %v2196_v15 }
  0xf1   :  { %v1714_v56 = vpop.eup %1713  ;;  %1321 = vst [vmem:[#allocation3 + $0x130] sm:$0xff] %v1257_v36  ;;  %v1226_v42 = vmul.f32 %v1712_v24, %v2142_v8  ;;  %1725 = vpow2.f32 %v1075_v14  ;;  %v956_v28 = vsub.f32 0.0, %v2199_v16  ;;  %v2210_v45 = vadd.f32 %v2022_v40, %v541_v23 }
  0xf2   :  { %v1716_v29 = vpop.eup %1715  ;;  %1337 = vst [vmem:[#allocation3 + $0x1b0] sm:$0xff] %v1273_v25  ;;  %v1146_v30 = vadd.f32 1.0, %v1714_v56  ;;  %1727 = vpow2.f32 %v981_v17  ;;  %v909_v31 = vsub.f32 0.0, %v2203_v26  ;;  %v1045_v8 = vmul.f32 1.442695, %v940_v27 }
  0xf3   :  { %v1718_v43 = vpop.eup %1717  ;;  %1290 = vst [vmem:[#allocation3 + $0x38] sm:$0xff] %v1226_v42  ;;  %v1242_v34 = vmul.f32 %v1716_v29, %v2145_v50  ;;  %1729 = vpow2.f32 %v1013_v6  ;;  %v1077_v39 = vmul.f32 1.442695, %v956_v28  ;;  %v925_v49 = vsub.f32 0.0, %v2210_v45 }
  0xf4   :  { %v1720_v7 = vpop.eup %1719  ;;  %1731 = vrcp.f32 %v1146_v30  ;;  %v1099_v37 = vadd.f32 1.0, %v1718_v43  ;;  %v983_v48 = vmul.f32 1.442695, %v909_v31 }
  0xf5   :  { %v1722_v41 = vpop.eup %1721  ;;  %1306 = vst [vmem:[#allocation3 + $0xb8] sm:$0xff] %v1242_v34  ;;  %v1115_v44 = vadd.f32 1.0, %v1720_v7  ;;  %1733 = vpow2.f32 %v1045_v8  ;;  %v581_v53 = vpop.f32.mrf.mxu2  ;;  %v1015_v52 = vmul.f32 1.442695, %v925_v49 }
  0xf6   :  { %v1724_v46 = vpop.eup %1723  ;;  %1735 = vrcp.f32 %v1099_v37  ;;  %v1131_v47 = vadd.f32 1.0, %v1722_v41  ;;  %v621_v12 = vpop.f32.mrf.mxu3  ;;  %v2216_v58 = vadd.f32 %v2022_v40, %v581_v53 }
  0xf7   :  { %v1726_v57 = vpop.eup %1725  ;;  %v1258_v50 = vmul.f32 %v1724_v46, %v2157_v18  ;;  %1737 = vrcp.f32 %v1115_v44  ;;  %v2219_v11 = vadd.f32 %v2022_v40, %v621_v12  ;;  %v503_v61 = vpop.f32.mrf.mxu0 }
  0xf8   :  { %v543_v62 = vpop.f32.mrf.mxu1  ;;  %v1728_v63 = vpop.eup %1727  ;;  %1739 = vrcp.f32 %v1131_v47  ;;  %v1147_v0 = vadd.f32 1.0, %v1726_v57  ;;  %v2222_v3 = vadd.f32 %v2022_v40, %v503_v61  ;;  %v941_v5 = vsub.f32 0.0, %v2216_v58 }
  0xf9   :  { %v2225_v51 = vadd.f32 %v2022_v40, %v543_v62  ;;  %v1730_v4 = vpop.eup %1729  ;;  %1322 = vst [vmem:[#allocation3 + $0x138] sm:$0xff] %v1258_v50  ;;  %v1100_v18 = vadd.f32 1.0, %v1728_v63  ;;  %1741 = vpow2.f32 %v1077_v39  ;;  %v957_v2 = vsub.f32 0.0, %v2219_v11 }
  0xfa   :  { %v1732_v32 = vpop.eup %1731  ;;  %1743 = vrcp.f32 %v1147_v0  ;;  %v1116_v10 = vadd.f32 1.0, %v1730_v4  ;;  %v910_v9 = vsub.f32 0.0, %v2222_v3  ;;  %v1047_v6 = vmul.f32 1.442695, %v941_v5 }
  0xfb   :  { %v1734_v13 = vpop.eup %1733  ;;  %v1274_v14 = vmul.f32 %v1732_v32, %v2160_v19  ;;  %1745 = vrcp.f32 %v1100_v18  ;;  %v926_v20 = vsub.f32 0.0, %v2225_v51  ;;  %v1079_v36 = vmul.f32 1.442695, %v957_v2 }
  0xfc   :  { %v1736_v33 = vpop.eup %1735  ;;  %1747 = vrcp.f32 %v1116_v10  ;;  %v1132_v17 = vadd.f32 1.0, %v1734_v13  ;;  %v985_v24 = vmul.f32 1.442695, %v910_v9 }
  0xfd   :  { %v1738_v21 = vpop.eup %1737  ;;  %1338 = vst [vmem:[#allocation3 + $0x1b8] sm:$0xff] %v1274_v14  ;;  %v1227_v35 = vmul.f32 %v1736_v33, %v2163_v38  ;;  %1749 = vpow2.f32 %v983_v48  ;;  %v583_v19 = vpop.f32.mrf.mxu2  ;;  %v1017_v31 = vmul.f32 1.442695, %v926_v20 }
  0xfe   :  { %v1740_v55 = vpop.eup %1739  ;;  %v1243_v23 = vmul.f32 %v1738_v21, %v2166_v22  ;;  %1751 = vrcp.f32 %v1132_v17  ;;  %v623_v25 = vpop.f32.mrf.mxu3  ;;  %v2236_v27 = vadd.f32 %v2022_v40, %v583_v19 }
  0xff   :  { %v1742_v56 = vpop.eup %1741  ;;  %1291 = vst [vmem:[#allocation3 + $0x40] sm:$0xff] %v1227_v35  ;;  %v1259_v42 = vmul.f32 %v1740_v55, %v2176_v1  ;;  %1753 = vpow2.f32 %v1015_v52  ;;  %v2239_v28 = vadd.f32 %v2022_v40, %v623_v25  ;;  %v506_v38 = vpop.f32.mrf.mxu0 }
 0x100   :  { %v546_v29 = vpop.f32.mrf.mxu1  ;;  %v1744_v30 = vpop.eup %1743  ;;  %1307 = vst [vmem:[#allocation3 + $0xc0] sm:$0xff] %v1243_v23  ;;  %v1148_v22 = vadd.f32 1.0, %v1742_v56  ;;  %1755 = vpow2.f32 %v1047_v6  ;;  %v2242_v43 = vadd.f32 %v2022_v40, %v506_v38  ;;  %v942_v8 = vsub.f32 0.0, %v2236_v27 }
 0x101   :  { %v1746_v34 = vpop.eup %1745  ;;  %1323 = vst [vmem:[#allocation3 + $0x140] sm:$0xff] %v1259_v42  ;;  %v1275_v1 = vmul.f32 %v1744_v30, %v2179_v54  ;;  %1757 = vpow2.f32 %v1079_v36  ;;  %v958_v7 = vsub.f32 0.0, %v2239_v28  ;;  %v2250_v39 = vadd.f32 %v2022_v40, %v546_v29 }
 0x102   :  { %v1748_v37 = vpop.eup %1747  ;;  %v1228_v41 = vmul.f32 %v1746_v34, %v2182_v59  ;;  %1759 = vrcp.f32 %v1148_v22  ;;  %v911_v44 = vsub.f32 0.0, %v2242_v43  ;;  %v1049_v54 = vmul.f32 1.442695, %v942_v8  ;;  %v2277_v8 = vld [vmem:[%s2346_s2] ss:$0 sm:$0xff]  ;;  %s1876_s2 = smov [#allocation3]  }
 0x103   :  { %v1750_v46 = vpop.eup %1749  ;;  %1339 = vst [vmem:[#allocation3 + $0x1c0] sm:$0xff] %v1275_v1  ;;  %v1244_v47 = vmul.f32 %v1748_v37, %v2185_v60  ;;  %1761 = vpow2.f32 %v985_v24  ;;  %v1081_v48 = vmul.f32 1.442695, %v958_v7  ;;  %v927_v62 = vsub.f32 0.0, %v2250_v39  ;;  %s1351_s11 = sshll.u32 %s1876_s2, 4  ;;  %s1352_s11 = int_to_ptr.vmem [resolvable:$true] %s1351_s11 }
 0x104   :  { %v1752_v49 = vpop.eup %1751  ;;  %1292 = vst [vmem:[#allocation3 + $0x48] sm:$0xff] %v1228_v41  ;;  %v1101_v53 = vadd.f32 1.0, %v1750_v46  ;;  %1763 = vpow2.f32 %v1017_v31  ;;  %v987_v61 = vmul.f32 1.442695, %v911_v44 }
 0x105   :  { %v1754_v12 = vpop.eup %1753  ;;  %1308 = vst [vmem:[#allocation3 + $0xc8] sm:$0xff] %v1244_v47  ;;  %v1260_v59 = vmul.f32 %v1752_v49, %v2196_v15  ;;  %1765 = vpow2.f32 %v1049_v54  ;;  %v586_v63 = vpop.f32.mrf.mxu2 }
 0x106   :  { %v1756_v57 = vpop.eup %1755  ;;  %1767 = vrcp.f32 %v1101_v53  ;;  %v1117_v50 = vadd.f32 1.0, %v1754_v12  ;;  %v626_v60 = vpop.f32.mrf.mxu3  ;;  %v2256_v18 = vadd.f32 %v2022_v40, %v586_v63 }
 0x107   :  { %v1758_v0 = vpop.eup %1757  ;;  %1324 = vst [vmem:[#allocation3 + $0x148] sm:$0xff] %v1260_v59  ;;  %v1133_v4 = vadd.f32 1.0, %v1756_v57  ;;  %1769 = vpow2.f32 %v1081_v48  ;;  %v2259_v5 = vadd.f32 %v2022_v40, %v626_v60  ;;  %v508_v15 = vpop.f32.mrf.mxu0 }
 0x108   :  { %v548_v2 = vpop.f32.mrf.mxu1  ;;  %v1760_v32 = vpop.eup %1759  ;;  %1771 = vrcp.f32 %v1117_v50  ;;  %v1149_v10 = vadd.f32 1.0, %v1758_v0  ;;  %v2262_v9 = vadd.f32 %v2022_v40, %v508_v15  ;;  %v943_v33 = vsub.f32 0.0, %v2256_v18 }
 0x109   :  { %v2265_v13 = vadd.f32 %v2022_v40, %v548_v2  ;;  %v1762_v14 = vpop.eup %1761  ;;  %v1276_v52 = vmul.f32 %v1760_v32, %v2199_v16  ;;  %1773 = vrcp.f32 %v1133_v4  ;;  %v959_v17 = vsub.f32 0.0, %v2259_v5 }
 0x10a   :  { %v1764_v6 = vpop.eup %1763  ;;  %1775 = vrcp.f32 %v1149_v10  ;;  %v1102_v20 = vadd.f32 1.0, %v1762_v14  ;;  %v912_v21 = vsub.f32 0.0, %v2262_v9  ;;  %v1019_v40 = vmul.f32 1.442695, %v927_v62 }
 0x10b   :  { %v928_v35 = vsub.f32 0.0, %v2265_v13  ;;  %v1766_v36 = vpop.eup %1765  ;;  %1340 = vst [vmem:[#allocation3 + $0x1c8] sm:$0xff] %v1276_v52  ;;  %v1118_v55 = vadd.f32 1.0, %v1764_v6  ;;  %1777 = vpow2.f32 %v987_v61  ;;  %v1051_v25 = vmul.f32 1.442695, %v943_v33 }
 0x10c   :  { %v1768_v23 = vpop.eup %1767  ;;  %1779 = vrcp.f32 %v1102_v20  ;;  %v1134_v16 = vadd.f32 1.0, %v1766_v36  ;;  %v1083_v56 = vmul.f32 1.442695, %v959_v17  ;;  %v989_v29 = vmul.f32 1.442695, %v912_v21 }
 0x10d   :  { %v1770_v24 = vpop.eup %1769  ;;  %v1229_v19 = vmul.f32 %v1768_v23, %v2203_v26  ;;  %1781 = vrcp.f32 %v1118_v55  ;;  %v1021_v30 = vmul.f32 1.442695, %v928_v35  ;;  %v588_v22 = vpop.f32.mrf.mxu2 }
 0x10e   :  { %v1772_v42 = vpop.eup %1771  ;;  %1783 = vrcp.f32 %v1134_v16  ;;  %v1150_v38 = vadd.f32 1.0, %v1770_v24  ;;  %v628_v31 = vpop.f32.mrf.mxu3  ;;  %v2280_v26 = vadd.f32 %v2277_v8, %v588_v22 }
 0x10f   :  { %v1774_v34 = vpop.eup %1773  ;;  %1293 = vst [vmem:[#allocation3 + $0x50] sm:$0xff] %v1229_v19  ;;  %v1245_v1 = vmul.f32 %v1772_v42, %v2210_v45  ;;  %1785 = vpow2.f32 %v1019_v40  ;;  %v2283_v7 = vadd.f32 %v2277_v8, %v628_v31  ;;  %v511_v37 = vpop.f32.mrf.mxu0 }
 0x110   :  { %v551_v41 = vpop.f32.mrf.mxu1  ;;  %v1776_v44 = vpop.eup %1775  ;;  %v1261_v46 = vmul.f32 %v1774_v34, %v2216_v58  ;;  %1787 = vrcp.f32 %v1150_v38  ;;  %v2287_v45 = vadd.f32 %v2277_v8, %v511_v37  ;;  %v944_v49 = vsub.f32 0.0, %v2280_v26 }
 0x111   :  { %v2290_v47 = vadd.f32 %v2277_v8, %v551_v41  ;;  %v1778_v54 = vpop.eup %1777  ;;  %1309 = vst [vmem:[#allocation3 + $0xd0] sm:$0xff] %v1245_v1  ;;  %v1277_v48 = vmul.f32 %v1776_v44, %v2219_v11  ;;  %1789 = vpow2.f32 %v1051_v25  ;;  %v960_v53 = vsub.f32 0.0, %v2283_v7 }
 0x112   :  { %v1780_v12 = vpop.eup %1779  ;;  %1325 = vst [vmem:[#allocation3 + $0x150] sm:$0xff] %v1261_v46  ;;  %v1103_v59 = vadd.f32 1.0, %v1778_v54  ;;  %1791 = vpow2.f32 %v1083_v56  ;;  %v913_v58 = vsub.f32 0.0, %v2287_v45  ;;  %v1053_v61 = vmul.f32 1.442695, %v944_v49 }
 0x113   :  { %v1782_v57 = vpop.eup %1781  ;;  %1341 = vst [vmem:[#allocation3 + $0x1d0] sm:$0xff] %v1277_v48  ;;  %v1230_v50 = vmul.f32 %v1780_v12, %v2222_v3  ;;  %1793 = vpow2.f32 %v989_v29  ;;  %v1085_v62 = vmul.f32 1.442695, %v960_v53  ;;  %v929_v15 = vsub.f32 0.0, %v2290_v47 }
 0x114   :  { %v1784_v63 = vpop.eup %1783  ;;  %v1246_v11 = vmul.f32 %v1782_v57, %v2225_v51  ;;  %1795 = vrcp.f32 %v1103_v59  ;;  %v991_v4 = vmul.f32 1.442695, %v913_v58 }
 0x115   :  { %v1786_v60 = vpop.eup %1785  ;;  %1294 = vst [vmem:[#allocation3 + $0x58] sm:$0xff] %v1230_v50  ;;  %v1262_v0 = vmul.f32 %v1784_v63, %v2236_v27  ;;  %1797 = vpow2.f32 %v1021_v30  ;;  %v591_v3 = vpop.f32.mrf.mxu2  ;;  %v1023_v55 = vmul.f32 1.442695, %v929_v15 }
 0x116   :  { %v1788_v2 = vpop.eup %1787  ;;  %1310 = vst [vmem:[#allocation3 + $0xd8] sm:$0xff] %v1246_v11  ;;  %v1119_v32 = vadd.f32 1.0, %v1786_v60  ;;  %1799 = vpow2.f32 %v1053_v61  ;;  %v631_v10 = vpop.f32.mrf.mxu3  ;;  %v2302_v51 = vadd.f32 %v2277_v8, %v591_v3 }
 0x117   :  { %v1790_v14 = vpop.eup %1789  ;;  %1326 = vst [vmem:[#allocation3 + $0x158] sm:$0xff] %v1262_v0  ;;  %v1278_v52 = vmul.f32 %v1788_v2, %v2239_v28  ;;  %1801 = vpow2.f32 %v1085_v62  ;;  %v2305_v27 = vadd.f32 %v2277_v8, %v631_v10  ;;  %v513_v33 = vpop.f32.mrf.mxu0 }
 0x118   :  { %v553_v17 = vpop.f32.mrf.mxu1  ;;  %v1792_v6 = vpop.eup %1791  ;;  %1803 = vrcp.f32 %v1119_v32  ;;  %v1135_v20 = vadd.f32 1.0, %v1790_v14  ;;  %v2308_v21 = vadd.f32 %v2277_v8, %v513_v33  ;;  %v945_v40 = vsub.f32 0.0, %v2302_v51 }
 0x119   :  { %v2311_v35 = vadd.f32 %v2277_v8, %v553_v17  ;;  %v1794_v36 = vpop.eup %1793  ;;  %1342 = vst [vmem:[#allocation3 + $0x1d8] sm:$0xff] %v1278_v52  ;;  %v1151_v28 = vadd.f32 1.0, %v1792_v6  ;;  %1805 = vpow2.f32 %v991_v4  ;;  %v961_v24 = vsub.f32 0.0, %v2305_v27 }
 0x11a   :  { %v1796_v23 = vpop.eup %1795  ;;  %1807 = vrcp.f32 %v1135_v20  ;;  %v1104_v16 = vadd.f32 1.0, %v1794_v36  ;;  %v914_v38 = vsub.f32 0.0, %v2308_v21  ;;  %v1055_v31 = vmul.f32 1.442695, %v945_v40 }
 0x11b   :  { %v1798_v19 = vpop.eup %1797  ;;  %v1231_v25 = vmul.f32 %v1796_v23, %v2242_v43  ;;  %1809 = vrcp.f32 %v1151_v28  ;;  %v930_v29 = vsub.f32 0.0, %v2311_v35  ;;  %v1087_v37 = vmul.f32 1.442695, %v961_v24 }
 0x11c   :  { %v1800_v56 = vpop.eup %1799  ;;  %1811 = vrcp.f32 %v1104_v16  ;;  %v1120_v42 = vadd.f32 1.0, %v1798_v19  ;;  %v993_v12 = vmul.f32 1.442695, %v914_v38 }
 0x11d   :  { %v1802_v30 = vpop.eup %1801  ;;  %1295 = vst [vmem:[#allocation3 + $0x60] sm:$0xff] %v1231_v25  ;;  %v1136_v22 = vadd.f32 1.0, %v1800_v56  ;;  %1813 = vpow2.f32 %v1023_v55  ;;  %v593_v41 = vpop.f32.mrf.mxu2  ;;  %v1025_v59 = vmul.f32 1.442695, %v930_v29 }
 0x11e   :  { %v1804_v34 = vpop.eup %1803  ;;  %1815 = vrcp.f32 %v1120_v42  ;;  %v1152_v1 = vadd.f32 1.0, %v1802_v30  ;;  %v633_v44 = vpop.f32.mrf.mxu3  ;;  %v2320_v54 = vadd.f32 %v2277_v8, %v593_v41 }
 0x11f   :  { %v1806_v43 = vpop.eup %1805  ;;  %v1247_v46 = vmul.f32 %v1804_v34, %v2250_v39  ;;  %1817 = vrcp.f32 %v1136_v22  ;;  %v2323_v48 = vadd.f32 %v2277_v8, %v633_v44 }
 0x120   :  { %v1808_v49 = vpop.eup %1807  ;;  %1819 = vrcp.f32 %v1152_v1  ;;  %v1105_v53 = vadd.f32 1.0, %v1806_v43  ;;  %v946_v50 = vsub.f32 0.0, %v2320_v54 }
 0x121   :  { %v1810_v58 = vpop.eup %1809  ;;  %1311 = vst [vmem:[#allocation3 + $0xe0] sm:$0xff] %v1247_v46  ;;  %v1263_v57 = vmul.f32 %v1808_v49, %v2256_v18  ;;  %1821 = vpow2.f32 %v1055_v31  ;;  %v962_v39 = vsub.f32 0.0, %v2323_v48 }
 0x122   :  { %v1812_v61 = vpop.eup %1811  ;;  %v1279_v62 = vmul.f32 %v1810_v58, %v2259_v5  ;;  %1823 = vrcp.f32 %v1105_v53  ;;  %v1057_v11 = vmul.f32 1.442695, %v946_v50 }
 0x123   :  { %v1814_v8 = vpop.eup %1813  ;;  %1327 = vst [vmem:[#allocation3 + $0x160] sm:$0xff] %v1263_v57  ;;  %v1232_v63 = vmul.f32 %v1812_v61, %v2262_v9  ;;  %1825 = vpow2.f32 %v1087_v37  ;;  %v1089_v18 = vmul.f32 1.442695, %v962_v39 }
 0x124   :  { %v1816_v60 = vpop.eup %1815  ;;  %1343 = vst [vmem:[#allocation3 + $0x1e0] sm:$0xff] %v1279_v62  ;;  %v1121_v0 = vadd.f32 1.0, %v1814_v8  ;;  %1827 = vpow2.f32 %v993_v12 }
 0x125   :  { %v1818_v4 = vpop.eup %1817  ;;  %1296 = vst [vmem:[#allocation3 + $0x68] sm:$0xff] %v1232_v63  ;;  %v1248_v15 = vmul.f32 %v1816_v60, %v2265_v13  ;;  %1829 = vpow2.f32 %v1025_v59 }
 0x126   :  { %v1820_v2 = vpop.eup %1819  ;;  %v1264_v5 = vmul.f32 %v1818_v4, %v2280_v26  ;;  %1831 = vrcp.f32 %v1121_v0 }
 0x127   :  { %v1822_v32 = vpop.eup %1821  ;;  %1312 = vst [vmem:[#allocation3 + $0xe8] sm:$0xff] %v1248_v15  ;;  %v1280_v9 = vmul.f32 %v1820_v2, %v2283_v7  ;;  %1833 = vpow2.f32 %v1057_v11 }
 0x128   :  { %v1824_v3 = vpop.eup %1823  ;;  %1328 = vst [vmem:[#allocation3 + $0x168] sm:$0xff] %v1264_v5  ;;  %v1137_v10 = vadd.f32 1.0, %v1822_v32  ;;  %1835 = vpow2.f32 %v1089_v18 }
 0x129   :  { %v1826_v14 = vpop.eup %1825  ;;  %1344 = vst [vmem:[#allocation3 + $0x1e8] sm:$0xff] %v1280_v9  ;;  %v1233_v52 = vmul.f32 %v1824_v3, %v2287_v45 }
 0x12a   :  { %v1828_v33 = vpop.eup %1827  ;;  %1837 = vrcp.f32 %v1137_v10  ;;  %v1153_v13 = vadd.f32 1.0, %v1826_v14 }
 0x12b   :  { %v1830_v17 = vpop.eup %1829  ;;  %1297 = vst [vmem:[#allocation3 + $0x70] sm:$0xff] %v1233_v52  ;;  %v1106_v26 = vadd.f32 1.0, %v1828_v33 }
 0x12c   :  { %v1832_v6 = vpop.eup %1831  ;;  %1839 = vrcp.f32 %v1153_v13  ;;  %v1122_v20 = vadd.f32 1.0, %v1830_v17 }
 0x12d   :  { %v1834_v36 = vpop.eup %1833  ;;  %v1249_v7 = vmul.f32 %v1832_v6, %v2290_v47  ;;  %1841 = vrcp.f32 %v1106_v26 }
 0x12e   :  { %v1836_v28 = vpop.eup %1835  ;;  %1843 = vrcp.f32 %v1122_v20  ;;  %v1138_v55 = vadd.f32 1.0, %v1834_v36 }
 0x12f   :  { %1313 = vst [vmem:[#allocation3 + $0xf0] sm:$0xff] %v1249_v7  ;;  %v1154_v40 = vadd.f32 1.0, %v1836_v28 }
 0x130   :  { %v1838_v23 = vpop.eup %1837  ;;  %1845 = vrcp.f32 %v1138_v55 }
 0x131   :  { %v1265_v45 = vmul.f32 %v1838_v23, %v2302_v51  ;;  %1847 = vrcp.f32 %v1154_v40 }
 0x132   :  { %v1840_v16 = vpop.eup %1839 }
 0x133   :  { %v1842_v24 = vpop.eup %1841  ;;  %1329 = vst [vmem:[#allocation3 + $0x170] sm:$0xff] %v1265_v45  ;;  %v1281_v19 = vmul.f32 %v1840_v16, %v2305_v27 }
 0x134   :  { %v1844_v25 = vpop.eup %1843  ;;  %v1234_v56 = vmul.f32 %v1842_v24, %v2308_v21 }
 0x135   :  { %1345 = vst [vmem:[#allocation3 + $0x1f0] sm:$0xff] %v1281_v19  ;;  %v1250_v47 = vmul.f32 %v1844_v25, %v2311_v35 }
 0x136   :  { %v1846_v42 = vpop.eup %1845  ;;  %1298 = vst [vmem:[#allocation3 + $0x78] sm:$0xff] %v1234_v56 }
 0x137   :  { %v1848_v51 = vpop.eup %1847  ;;  %1314 = vst [vmem:[#allocation3 + $0xf8] sm:$0xff] %v1250_v47  ;;  %v1266_v38 = vmul.f32 %v1846_v42, %v2320_v54 }
 0x138   :  { %v1282_v27 = vmul.f32 %v1848_v51, %v2323_v48 }
 0x139   :  { %1330 = vst [vmem:[#allocation3 + $0x178] sm:$0xff] %v1266_v38 }
 0x13a   :  { %1346 = vst [vmem:[#allocation3 + $0x1f8] sm:$0xff] %v1282_v27 }
 0x13b   :  { %1359 = dma.vmem_to_hbm [thread:$0]  %s1352_s11, 8192, %s1354_s14, [#allocation4], %s1877_s15, %s1877_s15, %s1878_s16  }
 0x13c   :  { %1874 = dma.done.wait [#allocation4], 8192  }
 0x13d   :  { %1875 = vsyncadd [#allocation4], 4294959104 }
 0x13e   :  { %1364 = vsyncpa [#allocation4], 1 }

</bundles_post_ra>
